<compile_context>
chip_gen: v6e
topology: v6e:2x2x1
jax: 0.10.0
libtpu: 0.0.40
codegen_flags: <defaults>
</compile_context>

<pallas_src>
import math

import numpy as np

import jax
import jax.numpy as jnp
from jax.experimental import pallas as pl
from jax.experimental.pallas import tpu as pltpu

EPS = 1e-5
_LANE = 128


def _round_up(x, m):
    return (x + m - 1) // m * m


def _make_taps(l_in, K, s, p):
    """Decompose a stride-s conv into stride-1 taps over the phase-split input.

    Tap k reads phase r at lane offset q:  y[l] += W_k @ x_phase_r[l + q],
    valid iff 0 <= l + q < ub (ub = #elements of phase r); this reproduces the
    conv's zero padding exactly.
    """
    taps = []
    for k in range(K):
        d = k - p
        q, r = d // s, d % s
        ub = -(-(l_in - r) // s)  # ceil((l_in - r) / s)
        taps.append((k, r, q, ub))
    return taps


def _shifted(x, q):
    """result[:, m] = x[:, m + q] via an XLU lane rotate (q static).

    Wrapped / cross-sample lanes are zeroed by the per-tap mask downstream."""
    if q == 0:
        return x
    return pltpu.roll(x, (-q) % x.shape[-1], axis=1)


def _stats(y, vo, inv_cnt):
    """Per-channel [sum, centered SSQ] of a (C, TM) tile -> (1, C, 2).

    Centered about the tile mean (combined across tiles with Chan's parallel
    formula in the wrapper) for good conditioning.  Kept sublane-major; a
    lane-dense (2, C) layout would need an extra in-kernel transpose for a few
    hundred bytes of stores per tile.
    """
    s1 = jnp.sum(y, axis=1, keepdims=True)          # (C, 1)
    mu = s1 * inv_cnt
    d = (y - mu) * vo                               # exclude padded lanes
    m2 = jnp.sum(d * d, axis=1, keepdims=True)      # (C, 1)
    return jnp.concatenate([s1, m2], axis=1)[None]  # (1, C, 2)


# ---------------------------------------------------------------------------
# Kernels
# ---------------------------------------------------------------------------
def _make_kernel_a(downsample, taps, cdt, inv_cnt):
    """conv1 (+ downsample 1x1 conv) + bias; zero padded lanes; partial BN stats."""
    K = len(taps)

    def kernel(x_ref, m_ref, w1_ref, b1_ref, *rest):
        if downsample:
            wds_ref, bds_ref, y1_ref, st1_ref, sc_ref, stds_ref = rest
        else:
            y1_ref, st1_ref = rest
        vo = m_ref[K:K + 1, :]                       # (1, TM) valid-output-lane mask
        phases = [x_ref[r] for r in range(x_ref.shape[0])]
        # Fused taps: one MXU contraction over (K*Cin) instead of K partial matmuls.
        parts = [_shifted(phases[r], q) * m_ref[i:i + 1, :]
                 for i, (_k, r, q, _ub) in enumerate(taps)]
        xs = jnp.concatenate(parts, axis=0).astype(cdt)   # single MXU-feed cast
        y1 = jnp.dot(w1_ref[...], xs, preferred_element_type=jnp.float32) + b1_ref[...]
        y1 = y1 * vo                                  # keep lane padding at exactly zero
        y1_ref[...] = y1
        st1_ref[...] = _stats(y1, vo, inv_cnt)
        if downsample:
            # nn.Conv1d(k=1, stride=2) == matmul with the even phase of x.
            sc = jnp.dot(wds_ref[...], phases[0].astype(cdt),
                         preferred_element_type=jnp.float32) + bds_ref[...]
            sc = sc * vo
            sc_ref[...] = sc
            stds_ref[...] = _stats(sc, vo, inv_cnt)
    return kernel


def _make_kernel_b(taps, cdt, inv_cnt):
    """bn1 affine + conv2 + bias; zero padded lanes; partial BN stats."""
    K = len(taps)

    def kernel(y1_ref, m_ref, s1_ref, h1_ref, w2_ref, b2_ref, y2_ref, st2_ref):
        vo = m_ref[K:K + 1, :]
        y1 = y1_ref[...] * s1_ref[...] + h1_ref[...]       # bn1 affine (f32)
        parts = [_shifted(y1, q) * m_ref[i:i + 1, :]
                 for i, (_k, _r, q, _ub) in enumerate(taps)]
        xs = jnp.concatenate(parts, axis=0).astype(cdt)
        y2 = jnp.dot(w2_ref[...], xs, preferred_element_type=jnp.float32) + b2_ref[...]
        y2 = y2 * vo
        y2_ref[...] = y2
        st2_ref[...] = _stats(y2, vo, inv_cnt)
    return kernel


def _make_kernel_c(downsample):
    """bn2 (+ bn_ds) affine + residual add + ReLU (act2).  Pure elementwise."""
    def kernel(y2_ref, s2_ref, h2_ref, *rest):
        if downsample:
            sc_ref, sds_ref, hds_ref, out_ref = rest
            short = sc_ref[...] * sds_ref[...] + hds_ref[...]
        else:
            x_ref, out_ref = rest
            short = x_ref[0]                                # identity shortcut
        out_ref[...] = jnp.maximum(
            y2_ref[...] * s2_ref[...] + h2_ref[...] + short, 0.0)
    return kernel


# ---------------------------------------------------------------------------
# Wrapper
# ---------------------------------------------------------------------------
def basic_block_pallas(x, params, kernel_size, stride, downsample, *,
                       m_tile_lanes=2048, c_tile_lanes=4096,
                       mxu_dtype=jnp.float32):
    """x: (N, Cin, L) float32, NCL layout (PyTorch Conv1d convention)."""
    N, Cin, L = x.shape
    K, s = kernel_size, stride
    p = K // 2
    Lout = (L + 2 * p - K) // s + 1
    Cout = params["w1"].shape[0]
    cdt = mxu_dtype
    assert Cout % 8 == 0, "Cout must be a multiple of 8 (CPICANN uses 64/128)"

    taps1 = _make_taps(L, K, s, p)        # conv1 (stride s) over phase-split x
    taps2 = _make_taps(Lout, K, 1, p)     # conv2 (stride 1) over y1

    if downsample:
        assert s == 2, "downsample shortcut is Conv1d(k=1, stride=2) in the module"
        assert -(-L // 2) == Lout, "shortcut length must match main branch"
    else:
        assert Cin == Cout and Lout == L, "identity shortcut needs matching shapes"

    # ---- lane-dense, per-sample layout --------------------------------------
    max_ub = max(ub for (_, _, _, ub) in taps1)
    Lp = _round_up(max(Lout, max_ub), _LANE)       # lane slot per sample (mult of 128)
    Cin_p = _round_up(Cin, 8)                      # sublane-aligned tap stacking

    # Whole samples per tile; keep >= 2 grid tiles when N >= 2 so both v7x cores work.
    tb = max(1, min(N if N < 2 else N // 2, max(1, m_tile_lanes // Lp)))
    while N % tb:
        tb -= 1
    T, TM, Mp = N // tb, tb * Lp, N * Lp
    inv_cnt = 1.0 / float(tb * Lout)               # per-tile valid element count

    # Call C (pure elementwise) gets its own, larger flat lane tiling.
    def pick_tiles(total, cap, min_tiles):
        units = total // _LANE
        for t in range(1, units + 1):
            if units % t == 0 and t >= min_tiles and (units // t) * _LANE <= cap:
                return t
        return units
    Tc = pick_tiles(Mp, c_tile_lanes, 2 if Mp // _LANE >= 2 else 1)
    TMC = Mp // Tc

    # ---- glue: stride-phase split of x (same bytes as x; the K-tap view is
    # formed in-kernel with XLU rolls -- no K-times im2col blowup in HBM).
    xf = x.astype(jnp.float32)
    x_ph = jnp.zeros((s, Cin_p, N, Lp), jnp.float32)
    for r in range(s):
        xr = jnp.transpose(xf[:, :, r::s], (1, 0, 2))          # (Cin, N, ub_r)
        x_ph = x_ph.at[r, :Cin, :, :xr.shape[2]].set(xr)
    x_ph = x_ph.reshape(s, Cin_p, Mp)

    # ---- glue: precomputed 0/1 masks (per tap + valid-output row) -----------
    lane = np.tile(np.arange(Lp, dtype=np.int64), tb)           # (TM,)

    def build_masks(taps):
        rows = [((lane + q >= 0) & (lane + q < ub)).astype(np.float32)
                for (_k, _r, q, ub) in taps]
        rows.append((lane < Lout).astype(np.float32))
        return jnp.asarray(np.stack(rows, axis=0))              # (K+1, TM) f32
    maskA, maskB = build_masks(taps1), build_masks(taps2)

    # ---- glue: fused conv weights (tap-major columns) ------------------------
    col = lambda v: v.reshape(-1, 1).astype(jnp.float32)
    w1f = jnp.transpose(params["w1"], (0, 2, 1))                # (Cout, K, Cin)
    w1f = jnp.pad(w1f, ((0, 0), (0, 0), (0, Cin_p - Cin)))
    w1f = w1f.reshape(Cout, K * Cin_p).astype(cdt)
    w2f = jnp.transpose(params["w2"], (0, 2, 1)).reshape(Cout, K * Cout).astype(cdt)
    b1c, b2c = col(params["b1"]), col(params["b2"])

    # ---- specs ---------------------------------------------------------------
    def full(shape):
        nd = len(shape)
        return pl.BlockSpec(shape, lambda t, _n=nd: (0,) * _n)

    x_spec = pl.BlockSpec((s, Cin_p, TM), lambda t: (0, 0, t))
    tile_ab = pl.BlockSpec((Cout, TM), lambda t: (0, t))
    tile_c = pl.BlockSpec((Cout, TMC), lambda t: (0, t))
    st_spec = pl.BlockSpec((1, Cout, 2), lambda t: (t, 0, 0))
    raw = lambda: jax.ShapeDtypeStruct((Cout, Mp), jnp.float32)
    stsh = lambda: jax.ShapeDtypeStruct((T, Cout, 2), jnp.float32)

    # ---- VMEM budget per call: double-buffered blocks + headroom, <= 48 MiB --
    def vmem_limit(block_bytes):
        return int(min(max(2 * block_bytes + (8 << 20), 32 << 20), 48 << 20))

    def cparams(block_bytes):
        return pltpu.CompilerParams(dimension_semantics=("parallel",),
                                    vmem_limit_bytes=vmem_limit(block_bytes))

    e = jnp.dtype(cdt).itemsize
    st_bytes = Cout * 2 * 4
    blk_a = (s * Cin_p * TM * 4 + (K + 1) * TM * 4 + Cout * K * Cin_p * e
             + Cout * 4 + Cout * TM * 4 + st_bytes)
    if downsample:
        blk_a += Cout * Cin_p * e + Cout * 4 + Cout * TM * 4 + st_bytes
    blk_b = (2 * Cout * TM * 4 + (K + 1) * TM * 4 + 3 * Cout * 4
             + Cout * K * Cout * e + st_bytes)
    blk_c = 2 * Cout * TMC * 4 + 2 * Cout * 4
    blk_c += (Cout * TMC * 4 + 2 * Cout * 4) if downsample else s * Cin_p * TMC * 4

    def cost(inputs, out_shapes, flops):
        nbytes = sum(int(a.size) * a.dtype.itemsize for a in inputs)
        nbytes += sum(math.prod(o.shape) * jnp.dtype(o.dtype).itemsize
                      for o in out_shapes)
        return pl.CostEstimate(flops=flops, transcendentals=0,
                               bytes_accessed=nbytes)

    # ---- call A: conv1 (+ downsample conv) + partial BN stats ----------------
    a_in = [x_ph, maskA, w1f, b1c]
    a_specs = [x_spec, full((K + 1, TM)), full(w1f.shape), full((Cout, 1))]
    a_out = [raw(), stsh()]
    a_ospecs = [tile_ab, st_spec]
    flops_a = 2 * Cout * K * Cin_p * Mp
    if downsample:
        wds = jnp.pad(params["wds"][:, :, 0], ((0, 0), (0, Cin_p - Cin))).astype(cdt)
        a_in += [wds, col(params["bds"])]
        a_specs += [full(wds.shape), full((Cout, 1))]
        a_out += [raw(), stsh()]
        a_ospecs += [tile_ab, st_spec]
        flops_a += 2 * Cout * Cin_p * Mp

    res_a = pl.pallas_call(
        _make_kernel_a(downsample, taps1, cdt, inv_cnt),
        grid=(T,),
        in_specs=a_specs, out_specs=tuple(a_ospecs), out_shape=tuple(a_out),
        compiler_params=cparams(blk_a), cost_estimate=cost(a_in, a_out, flops_a),
    )(*a_in)
    if downsample:
        y1_raw, st1, sc_raw, stds = res_a
    else:
        y1_raw, st1 = res_a

    # ---- glue: Chan's parallel combine of per-tile centered stats (tiny) -----
    n_t, n_all = float(tb * Lout), float(N * Lout)

    def bn_affine(stats, g, be):
        s1, m2 = stats[:, :, 0], stats[:, :, 1]             # (T, Cout) each
        mu_t = s1 / n_t
        mu = jnp.sum(s1, axis=0) / n_all
        m2_tot = jnp.sum(m2, axis=0) + n_t * jnp.sum((mu_t - mu[None, :]) ** 2, axis=0)
        var = m2_tot / n_all                                 # biased (training-mode BN)
        scale = g.astype(jnp.float32) * jax.lax.rsqrt(var + EPS)
        shift = be.astype(jnp.float32) - mu * scale
        return scale.reshape(-1, 1), shift.reshape(-1, 1)

    s1a, h1a = bn_affine(st1, params["g1"], params["be1"])

    # ---- call B: bn1 affine + conv2 + partial BN stats ------------------------
    b_in = [y1_raw, maskB, s1a, h1a, w2f, b2c]
    b_specs = [tile_ab, full((K + 1, TM)), full((Cout, 1)), full((Cout, 1)),
               full(w2f.shape), full((Cout, 1))]
    b_out = [raw(), stsh()]
    y2_raw, st2 = pl.pallas_call(
        _make_kernel_b(taps2, cdt, inv_cnt),
        grid=(T,),
        in_specs=b_specs, out_specs=(tile_ab, st_spec), out_shape=tuple(b_out),
        compiler_params=cparams(blk_b),
        cost_estimate=cost(b_in, b_out, 2 * Cout * K * Cout * Mp),
    )(*b_in)

    s2a, h2a = bn_affine(st2, params["g2"], params["be2"])

    # ---- call C: bn2 (+ bn_ds) affine + residual + ReLU (big flat lane tiles) -
    c_in = [y2_raw, s2a, h2a]
    c_specs = [tile_c, full((Cout, 1)), full((Cout, 1))]
    if downsample:
        sdsa, hdsa = bn_affine(stds, params["gds"], params["beds"])
        c_in += [sc_raw, sdsa, hdsa]
        c_specs += [tile_c, full((Cout, 1)), full((Cout, 1))]
    else:
        c_in += [x_ph]
        c_specs += [pl.BlockSpec((s, Cin_p, TMC), lambda t: (0, 0, t))]
    c_out = raw()
    out2d = pl.pallas_call(
        _make_kernel_c(downsample),
        grid=(Tc,),
        in_specs=c_specs, out_specs=tile_c, out_shape=c_out,
        compiler_params=cparams(blk_c),
        cost_estimate=cost(c_in, [c_out], 6 * Cout * Mp),
    )(*c_in)

    # ---- back to NCL, drop lane padding ---------------------------------------
    return jnp.transpose(out2d.reshape(Cout, N, Lp)[:, :, :Lout], (1, 0, 2))


# ---------------------------------------------------------------------------
# Pure-JAX reference (mirrors the PyTorch module) for verification.
# ---------------------------------------------------------------------------
def basic_block_ref(x, params, kernel_size, stride, downsample):
    def conv1d(z, w, b, s, p):
        y = jax.lax.conv_general_dilated(
            z, w, window_strides=(s,), padding=[(p, p)],
            dimension_numbers=("NCH", "OIH", "NCH"))
        return y + b[None, :, None]

    def bn(z, g, b):
        m = z.mean(axis=(0, 2), keepdims=True)
        v = ((z - m) ** 2).mean(axis=(0, 2), keepdims=True)
        return (z - m) / jnp.sqrt(v + EPS) * g[None, :, None] + b[None, :, None]

    shortcut = x
    y = conv1d(x, params["w1"], params["b1"], stride, kernel_size // 2)
    y = bn(y, params["g1"], params["be1"])
    y = conv1d(y, params["w2"], params["b2"], 1, kernel_size // 2)
    y = bn(y, params["g2"], params["be2"])
    if downsample:
        shortcut = conv1d(x, params["wds"], params["bds"], 2, 0)
        shortcut = bn(shortcut, params["gds"], params["beds"])
    return jax.nn.relu(y + shortcut)


def init_params(key, cin, cout, K, downsample):
    ks = iter(jax.random.split(key, 16))
    nrm = lambda shape, sd: sd * jax.random.normal(next(ks), shape, jnp.float32)
    prm = {
        "w1": nrm((cout, cin, K), 0.2), "b1": nrm((cout,), 0.1),
        "g1": 1.0 + nrm((cout,), 0.1), "be1": nrm((cout,), 0.1),
        "w2": nrm((cout, cout, K), 0.2), "b2": nrm((cout,), 0.1),
        "g2": 1.0 + nrm((cout,), 0.1), "be2": nrm((cout,), 0.1),
    }
    if downsample:
        prm.update({
            "wds": nrm((cout, cin, 1), 0.2), "bds": nrm((cout,), 0.1),
            "gds": 1.0 + nrm((cout,), 0.1), "beds": nrm((cout,), 0.1),
        })
    return prm


def _check(out, ref, atol, rtol, name):
    assert out.shape == ref.shape, (name, out.shape, ref.shape)
    err = float(jnp.max(jnp.abs(out - ref)))
    assert jnp.allclose(out, ref, atol=atol, rtol=rtol), f"{name}: max|err|={err}"


if __name__ == "__main__":
    key = jax.random.PRNGKey(0)
    k_x, k_p1, k_x2, k_p2 = jax.random.split(key, 4)

    # Case 1: strided block with downsample (inchannel=4 -> outchannel=8, stride 2).
    N, Cin, Cout, L, K = 2, 4, 8, 16, 3
    x = jax.random.normal(k_x, (N, Cin, L), jnp.float32)
    params = init_params(k_p1, Cin, Cout, K, downsample=True)
    out = basic_block_pallas(x, params, kernel_size=K, stride=2, downsample=True)
    jax.block_until_ready(out)
    ref = basic_block_ref(x, params, kernel_size=K, stride=2, downsample=True)
    _check(out, ref, 2e-3, 2e-3, "case1(f32)")

    # Case 2: identity-shortcut block (stride 1, 8 -> 8); the N//2 cap forces a
    # multi-tile "parallel" grid (one sample per tile).
    x2 = jax.random.normal(k_x2, (N, Cout, L), jnp.float32)
    params2 = init_params(k_p2, Cout, Cout, K, downsample=False)
    out2 = basic_block_pallas(x2, params2, kernel_size=K, stride=1, downsample=False)
    jax.block_until_ready(out2)
    ref2 = basic_block_ref(x2, params2, kernel_size=K, stride=1, downsample=False)
    _check(out2, ref2, 2e-3, 2e-3, "case2(f32)")

    # Case 3: bf16 MXU feed (single cast per conv); accumulation/BN stay f32.
    out3 = basic_block_pallas(x, params, kernel_size=K, stride=2,
                              downsample=True, mxu_dtype=jnp.bfloat16)
    jax.block_until_ready(out3)
    _check(out3, ref, 5e-2, 5e-2, "case3(bf16)")

    print("KERNEL_OK")
</pallas_src>

<mosaic_0001>
module attributes {stable_mosaic.version = 11 : i64} {
  func.func @kernel(%arg0: i32, %arg1: memref<2x8x128xf32, #tpu.memory_space<vmem>>, %arg2: memref<4x128xf32, #tpu.memory_space<vmem>>, %arg3: memref<8x24xf32, #tpu.memory_space<vmem>>, %arg4: memref<8x1xf32, #tpu.memory_space<vmem>>, %arg5: memref<8x8xf32, #tpu.memory_space<vmem>>, %arg6: memref<8x1xf32, #tpu.memory_space<vmem>>, %arg7: memref<8x128xf32, #tpu.memory_space<vmem>>, %arg8: memref<1x8x2xf32, #tpu.memory_space<vmem>>, %arg9: memref<8x128xf32, #tpu.memory_space<vmem>>, %arg10: memref<1x8x2xf32, #tpu.memory_space<vmem>>) attributes {dimension_semantics = [#tpu.dimension_semantics<parallel>], iteration_bounds = array<i64: 2>, scalar_prefetch = 0 : i64, scratch_operands = 0 : i64, tpu.core_type = #tpu.core_type<tc>, window_params = [{transform_indices = @transform_0, window_bounds = array<i64: 2, 8, 128>}, {pipeline_mode = #tpu.pipeline_mode<synchronous>, transform_indices = @transform_1, window_bounds = array<i64: 4, 128>}, {pipeline_mode = #tpu.pipeline_mode<synchronous>, transform_indices = @transform_2, window_bounds = array<i64: 8, 24>}, {pipeline_mode = #tpu.pipeline_mode<synchronous>, transform_indices = @transform_3, window_bounds = array<i64: 8, 1>}, {pipeline_mode = #tpu.pipeline_mode<synchronous>, transform_indices = @transform_4, window_bounds = array<i64: 8, 8>}, {pipeline_mode = #tpu.pipeline_mode<synchronous>, transform_indices = @transform_5, window_bounds = array<i64: 8, 1>}, {transform_indices = @transform_6, window_bounds = array<i64: 8, 128>}, {transform_indices = @transform_7, window_bounds = array<i64: 1, 8, 2>}, {transform_indices = @transform_8, window_bounds = array<i64: 8, 128>}, {transform_indices = @transform_9, window_bounds = array<i64: 1, 8, 2>}]} {
    %c3 = arith.constant 3 : index
    %c0 = arith.constant 0 : index
    %0 = vector.load %arg2[%c3, %c0] : memref<4x128xf32, #tpu.memory_space<vmem>>, vector<1x128xf32>
    %c0_0 = arith.constant 0 : index
    %c0_1 = arith.constant 0 : index
    %c0_2 = arith.constant 0 : index
    %1 = vector.load %arg1[%c0_0, %c0_1, %c0_2] : memref<2x8x128xf32, #tpu.memory_space<vmem>>, vector<1x8x128xf32>
    %2 = vector.shape_cast %1 : vector<1x8x128xf32> to vector<8x128xf32>
    %c1 = arith.constant 1 : index
    %c0_3 = arith.constant 0 : index
    %c0_4 = arith.constant 0 : index
    %3 = vector.load %arg1[%c1, %c0_3, %c0_4] : memref<2x8x128xf32, #tpu.memory_space<vmem>>, vector<1x8x128xf32>
    %4 = vector.shape_cast %3 : vector<1x8x128xf32> to vector<8x128xf32>
    %c1_i32 = arith.constant 1 : i32
    %5 = tpu.dynamic_rotate %4 by %c1_i32 dim 1 : vector<8x128xf32>, i32 -> vector<8x128xf32>
    %c0_5 = arith.constant 0 : index
    %c0_6 = arith.constant 0 : index
    %6 = vector.load %arg2[%c0_5, %c0_6] : memref<4x128xf32, #tpu.memory_space<vmem>>, vector<1x128xf32>
    %7 = vector.broadcast %6 : vector<1x128xf32> to vector<8x128xf32>
    %8 = arith.mulf %5, %7 : vector<8x128xf32>
    %c1_7 = arith.constant 1 : index
    %c0_8 = arith.constant 0 : index
    %9 = vector.load %arg2[%c1_7, %c0_8] : memref<4x128xf32, #tpu.memory_space<vmem>>, vector<1x128xf32>
    %10 = vector.broadcast %9 : vector<1x128xf32> to vector<8x128xf32>
    %11 = arith.mulf %2, %10 : vector<8x128xf32>
    %c2 = arith.constant 2 : index
    %c0_9 = arith.constant 0 : index
    %12 = vector.load %arg2[%c2, %c0_9] : memref<4x128xf32, #tpu.memory_space<vmem>>, vector<1x128xf32>
    %13 = vector.broadcast %12 : vector<1x128xf32> to vector<8x128xf32>
    %14 = arith.mulf %4, %13 : vector<8x128xf32>
    %15 = tpu.concatenate %8, %11, %14 in 0 : vector<8x128xf32>, vector<8x128xf32>, vector<8x128xf32> -> vector<24x128xf32>
    %c0_10 = arith.constant 0 : index
    %c0_11 = arith.constant 0 : index
    %16 = vector.load %arg3[%c0_10, %c0_11] : memref<8x24xf32, #tpu.memory_space<vmem>>, vector<8x24xf32>
    %cst = arith.constant dense<0.000000e+00> : vector<8x128xf32>
    %17 = tpu.matmul %16, %15, %cst {dimension_numbers = #tpu.dot_dimension_numbers<[1], [0], [0], [1], [0, 0, 1, 1], [], []>} : vector<8x24xf32>, vector<24x128xf32>, vector<8x128xf32> -> vector<8x128xf32>
    %c0_12 = arith.constant 0 : index
    %c0_13 = arith.constant 0 : index
    %18 = vector.load %arg4[%c0_12, %c0_13] : memref<8x1xf32, #tpu.memory_space<vmem>>, vector<8x1xf32>
    %19 = vector.broadcast %18 : vector<8x1xf32> to vector<8x128xf32>
    %20 = arith.addf %17, %19 : vector<8x128xf32>
    %21 = vector.broadcast %0 : vector<1x128xf32> to vector<8x128xf32>
    %22 = arith.mulf %20, %21 : vector<8x128xf32>
    %c0_14 = arith.constant 0 : index
    %c0_15 = arith.constant 0 : index
    %23 = vector.load %arg7[%c0_14, %c0_15] : memref<8x128xf32, #tpu.memory_space<vmem>>, vector<8x128xf32>
    tpu.vector_store %arg7[%c0_14, %c0_15], %22 {strides = array<i32>} : memref<8x128xf32, #tpu.memory_space<vmem>>, vector<8x128xf32>,
    %cst_16 = arith.constant dense<0.000000e+00> : vector<8xf32>
    %24 = vector.multi_reduction <add>, %22, %cst_16 [1] : vector<8x128xf32> to vector<8xf32>
    %25 = vector.shape_cast %24 : vector<8xf32> to vector<8x1xf32>
    %cst_17 = arith.constant 1.250000e-01 : f32
    %26 = vector.broadcast %cst_17 : f32 to vector<8x1xf32>
    %27 = arith.mulf %25, %26 : vector<8x1xf32>
    %28 = vector.broadcast %27 : vector<8x1xf32> to vector<8x128xf32>
    %29 = arith.subf %22, %28 : vector<8x128xf32>
    %30 = vector.broadcast %0 : vector<1x128xf32> to vector<8x128xf32>
    %31 = arith.mulf %29, %30 : vector<8x128xf32>
    %32 = arith.mulf %31, %31 : vector<8x128xf32>
    %cst_18 = arith.constant dense<0.000000e+00> : vector<8xf32>
    %33 = vector.multi_reduction <add>, %32, %cst_18 [1] : vector<8x128xf32> to vector<8xf32>
    %34 = vector.shape_cast %33 : vector<8xf32> to vector<8x1xf32>
    %35 = tpu.concatenate %25, %34 in 1 : vector<8x1xf32>, vector<8x1xf32> -> vector<8x2xf32>
    %36 = vector.shape_cast %35 : vector<8x2xf32> to vector<1x8x2xf32>
    %c0_19 = arith.constant 0 : index
    %c0_20 = arith.constant 0 : index
    %c0_21 = arith.constant 0 : index
    %37 = vector.load %arg8[%c0_19, %c0_20, %c0_21] : memref<1x8x2xf32, #tpu.memory_space<vmem>>, vector<1x8x2xf32>
    tpu.vector_store %arg8[%c0_19, %c0_20, %c0_21], %36 {strides = array<i32>} : memref<1x8x2xf32, #tpu.memory_space<vmem>>, vector<1x8x2xf32>,
    %c0_22 = arith.constant 0 : index
    %c0_23 = arith.constant 0 : index
    %38 = vector.load %arg5[%c0_22, %c0_23] : memref<8x8xf32, #tpu.memory_space<vmem>>, vector<8x8xf32>
    %cst_24 = arith.constant dense<0.000000e+00> : vector<8x128xf32>
    %39 = tpu.matmul %38, %2, %cst_24 {dimension_numbers = #tpu.dot_dimension_numbers<[1], [0], [0], [1], [0, 0, 1, 1], [], []>} : vector<8x8xf32>, vector<8x128xf32>, vector<8x128xf32> -> vector<8x128xf32>
    %c0_25 = arith.constant 0 : index
    %c0_26 = arith.constant 0 : index
    %40 = vector.load %arg6[%c0_25, %c0_26] : memref<8x1xf32, #tpu.memory_space<vmem>>, vector<8x1xf32>
    %41 = vector.broadcast %40 : vector<8x1xf32> to vector<8x128xf32>
    %42 = arith.addf %39, %41 : vector<8x128xf32>
    %43 = vector.broadcast %0 : vector<1x128xf32> to vector<8x128xf32>
    %44 = arith.mulf %42, %43 : vector<8x128xf32>
    %c0_27 = arith.constant 0 : index
    %c0_28 = arith.constant 0 : index
    %45 = vector.load %arg9[%c0_27, %c0_28] : memref<8x128xf32, #tpu.memory_space<vmem>>, vector<8x128xf32>
    tpu.vector_store %arg9[%c0_27, %c0_28], %44 {strides = array<i32>} : memref<8x128xf32, #tpu.memory_space<vmem>>, vector<8x128xf32>,
    %cst_29 = arith.constant dense<0.000000e+00> : vector<8xf32>
    %46 = vector.multi_reduction <add>, %44, %cst_29 [1] : vector<8x128xf32> to vector<8xf32>
    %47 = vector.shape_cast %46 : vector<8xf32> to vector<8x1xf32>
    %cst_30 = arith.constant 1.250000e-01 : f32
    %48 = vector.broadcast %cst_30 : f32 to vector<8x1xf32>
    %49 = arith.mulf %47, %48 : vector<8x1xf32>
    %50 = vector.broadcast %49 : vector<8x1xf32> to vector<8x128xf32>
    %51 = arith.subf %44, %50 : vector<8x128xf32>
    %52 = vector.broadcast %0 : vector<1x128xf32> to vector<8x128xf32>
    %53 = arith.mulf %51, %52 : vector<8x128xf32>
    %54 = arith.mulf %53, %53 : vector<8x128xf32>
    %cst_31 = arith.constant dense<0.000000e+00> : vector<8xf32>
    %55 = vector.multi_reduction <add>, %54, %cst_31 [1] : vector<8x128xf32> to vector<8xf32>
    %56 = vector.shape_cast %55 : vector<8xf32> to vector<8x1xf32>
    %57 = tpu.concatenate %47, %56 in 1 : vector<8x1xf32>, vector<8x1xf32> -> vector<8x2xf32>
    %58 = vector.shape_cast %57 : vector<8x2xf32> to vector<1x8x2xf32>
    %c0_32 = arith.constant 0 : index
    %c0_33 = arith.constant 0 : index
    %c0_34 = arith.constant 0 : index
    %59 = vector.load %arg10[%c0_32, %c0_33, %c0_34] : memref<1x8x2xf32, #tpu.memory_space<vmem>>, vector<1x8x2xf32>
    tpu.vector_store %arg10[%c0_32, %c0_33, %c0_34], %58 {strides = array<i32>} : memref<1x8x2xf32, #tpu.memory_space<vmem>>, vector<1x8x2xf32>,
    return
  }
  func.func @transform_0(%arg0: i32) -> (i32, i32, i32) {
    %c0_i32 = arith.constant 0 : i32
    %c0_i32_0 = arith.constant 0 : i32
    %c0_i32_1 = arith.constant 0 : i32
    return %c0_i32, %c0_i32_0, %arg0 : i32, i32, i32
  }
  func.func @transform_1(%arg0: i32) -> (i32, i32) {
    %c0_i32 = arith.constant 0 : i32
    %c0_i32_0 = arith.constant 0 : i32
    %c0_i32_1 = arith.constant 0 : i32
    return %c0_i32, %c0_i32_0 : i32, i32
  }
  func.func @transform_2(%arg0: i32) -> (i32, i32) {
    %c0_i32 = arith.constant 0 : i32
    %c0_i32_0 = arith.constant 0 : i32
    %c0_i32_1 = arith.constant 0 : i32
    return %c0_i32, %c0_i32_0 : i32, i32
  }
  func.func @transform_3(%arg0: i32) -> (i32, i32) {
    %c0_i32 = arith.constant 0 : i32
    %c0_i32_0 = arith.constant 0 : i32
    %c0_i32_1 = arith.constant 0 : i32
    return %c0_i32, %c0_i32_0 : i32, i32
  }
  func.func @transform_4(%arg0: i32) -> (i32, i32) {
    %c0_i32 = arith.constant 0 : i32
    %c0_i32_0 = arith.constant 0 : i32
    %c0_i32_1 = arith.constant 0 : i32
    return %c0_i32, %c0_i32_0 : i32, i32
  }
  func.func @transform_5(%arg0: i32) -> (i32, i32) {
    %c0_i32 = arith.constant 0 : i32
    %c0_i32_0 = arith.constant 0 : i32
    %c0_i32_1 = arith.constant 0 : i32
    return %c0_i32, %c0_i32_0 : i32, i32
  }
  func.func @transform_6(%arg0: i32) -> (i32, i32) {
    %c0_i32 = arith.constant 0 : i32
    %c0_i32_0 = arith.constant 0 : i32
    return %c0_i32, %arg0 : i32, i32
  }
  func.func @transform_7(%arg0: i32) -> (i32, i32, i32) {
    %c0_i32 = arith.constant 0 : i32
    %c0_i32_0 = arith.constant 0 : i32
    %c0_i32_1 = arith.constant 0 : i32
    return %arg0, %c0_i32, %c0_i32_0 : i32, i32, i32
  }
  func.func @transform_8(%arg0: i32) -> (i32, i32) {
    %c0_i32 = arith.constant 0 : i32
    %c0_i32_0 = arith.constant 0 : i32
    return %c0_i32, %arg0 : i32, i32
  }
  func.func @transform_9(%arg0: i32) -> (i32, i32, i32) {
    %c0_i32 = arith.constant 0 : i32
    %c0_i32_0 = arith.constant 0 : i32
    %c0_i32_1 = arith.constant 0 : i32
    return %arg0, %c0_i32, %c0_i32_0 : i32, i32, i32
  }
}

</mosaic_0001>

<bundles_post_ra>
// kernel: tpu_custom_call.1
= control target key start
LH: loop header
LB: loop body
LE: loop exit
PB: predicated region body
PF: predicated region fallthrough
CT: control target
= control target key end

     0   :  { %15 = vsyncpa [#allocation3], 0  ;;  %s1371_s0 = inlined_call_operand.hbm [shape: f32[2,8,256], index: 0, kind: input, shape index: {}]   ;;  %s1372_s1 = inlined_call_operand.hbm [shape: f32[4,128], index: 1, kind: input, shape index: {}]   ;;  %s1373_s2 = inlined_call_operand.vmem [shape: f32[8,24], index: 2, kind: input, shape index: {}]   ;;  %s1374_s3 = inlined_call_operand.vmem [shape: f32[8,1], index: 3, kind: input, shape index: {}]   ;;  %s1375_s4 = inlined_call_operand.vmem [shape: f32[8,8], index: 4, kind: input, shape index: {}]   ;;  %s1376_s5 = inlined_call_operand.vmem [shape: f32[8,1], index: 5, kind: input, shape index: {}]   ;;  %s1377_s6 = inlined_call_operand.hbm [shape: f32[8,256], index: 6, kind: output, shape index: {0}]   ;;  %s1378_s7 = inlined_call_operand.vmem [shape: f32[2,8,2], index: 7, kind: output, shape index: {1}]   ;;  %s1379_s8 = inlined_call_operand.hbm [shape: f32[8,256], index: 8, kind: output, shape index: {2}]   ;;  %s1380_s9 = inlined_call_operand.vmem [shape: f32[2,8,2], index: 9, kind: output, shape index: {3}]  }
   0x1   :  { %17 = vsyncpa [#allocation3 + $0x1], 0 }
   0x2   :  { %18 = vsyncpa [#allocation6], 0 }
   0x3   :  { %19 = vsyncpa [#allocation4], 0 }
   0x4   :  { %21 = vsyncpa [#allocation4 + $0x1], 0 }
   0x5   :  { %22 = vsyncpa [#allocation9], 0 }
   0x6   :  { %24 = vsyncpa [#allocation9 + $0x1], 0  ;;  %s1148_s30 = smov 0   ;;  %s1150_s10 = smov 0  }
   0x7   :  { %s1152_s11 = smov 0   ;;  %s1154_s12 = smov 0  }
   0x8 LB: > { %1390 = sst [smem:[#allocation14_spill]] %s1081_s11  ;;  %s1169_s13 = sadd.s32 4294967295, %s1085_s12   ;;  %s1085_s12 = sphi %s1154_s12, %s1411_s12   ;;  %s1081_s11 = sphi %s1152_s11, %s1413_s11   ;;  %s1077_s10 = sphi %s1150_s10, %s1415_s10   ;;  %s1073_s30 = sphi %s1148_s30, %s1414_s30  }
   0x9   : > { %s816_s14 = sadd.s32 4294967294, %s1085_s12   ;;  %s1173_s15 = sadd.s32 1, %s1085_s12  }
   0xa   : > { %1391 = sst [smem:[#allocation15_spill]] %s1173_s15  ;;  %s37_s16 = sadd.s32 1, %s1081_s11 }
   0xb   : > { %s34_s17 = ssub.s32 %s1085_s12, %s1173_s15  ;;  %p44_p0 = scmp.ne.s32.totalorder %s1081_s11, %s1077_s10 }
   0xc   : > { %p35_p1 = scmp.eq.s32.totalorder %s34_s17, 0  ;;  %p45_p2 = scmp.eq.s32.totalorder %s1085_s12, 0 }
   0xd   : > { %p50_p3 = scmp.ne.s32.totalorder %s1077_s10, %s1073_s30  ;;  %p1381_p4 = scmp.eq.s32.totalorder %s1169_s13, 0 }
   0xe   : > { %s1185_s18 = scalar_select %p35_p1, %s1081_s11, %s37_s16  }
   0xf   : > { %p1187_p5 = por %p45_p2, %p44_p0  ;;  %p1193_p6 = por %p1381_p4, %p50_p3 }
  0x10   : > { %1392 = sst [smem:[#allocation16_spill]] %s1185_s18  ;;  %p179_p7 = scmp.eq.s32.totalorder %s1169_s13, 1 }
  0x11   : > { %s1394_s20 = scalar_select %p1193_p6, 1, 0 }
  0x12   : > { %p185_p8 = scmp.eq.s32.totalorder %s816_s14, 1  ;;  %p817_p9 = scmp.ge.s32.totalorder %s1085_s12, 1 }
  0x13   : > { %p270_p10 = scmp.lt.s32.totalorder %s1085_s12, 3  ;;  %p1200_p11 = por %p179_p7, %p44_p0 }
  0x14   : > { %p1204_p12 = por %p185_p8, %p50_p3  ;;  %s1087_s24 = smov [#allocation5]  }
  0x15   : > { %s1395_s21 = scalar_select %p1200_p11, 1, 0 }
  0x16   : > { %s1396_s22 = scalar_select %p1204_p12, 1, 0 }
  0x17   : > { %p1208_p13 = pnand %p817_p9, %p270_p10  ;;  %s283_s25 = sshll.u32 %s1087_s24, 4  ;;  %s284_s25 = int_to_ptr.vmem [resolvable:$true] %s283_s25 }
  0x18   : > { %1397 = sst [smem:[#allocation17_spill]] %s1396_s22  ;;  %p888_p4 = scmp.lt.s32.totalorder %s1085_s12, 2 }
  0x19   : > { %s1398_s23 = scalar_select %p1208_p13, 1, 0 }
  0x1a   : > { %p872_p2 = pneg %p1208_p13  ;;  %p1399_p0 = scmp.eq.s32.totalorder %s1169_s13, 0 }
  0x1b   : > { %s306_s27 = sand.u32 1, %s1081_s11   ;;  %p1225_p3 = pnand %p888_p4, %p1187_p5 }
  0x1c   : > { %p1218_p7 = pnand %p872_p2, %p1399_p0  ;;  %s820_s29 = sshll.u32 %s306_s27, 4 }
  0x1d   : > { %s944_s14 = scalar_lea.vmem %s284_s25, 64  ;;  %p952_p12 = scmp.lt.s32.totalorder %s284_s25, %s284_s25 }
  0x1e   : > { %p935_p8 = pneg %p1218_p7  ;;  %p945_p9 = scmp.ne.s32.totalorder %s284_s25, %s944_s14 }
  0x1f   : > { %p953_p11 = scmp.lt.s32.totalorder %s944_s14, %s944_s14 }
  0x20   : > { %p947_p10 = pnand %p945_p9, %p935_p8 }
  0x21   : > { %p954_p2 = por %p953_p11, %p952_p12 }
  0x22   : > { %p948_p1 = pneg %p947_p10 }
  0x24   : > { %p955_p0 = pnand %p954_p2, %p948_p1 }
  0x26   : > { %958 = shalt.err (!%p955_p0)
}
  0x27   : > { %875 = dma.hbm_to_vmem [thread:$0]  (!%p1218_p7), %s1372_s1, 64, %s284_s25, [#allocation6]  }
  0x28   : > { %s821_s19 = sshll.u32 %s1085_s12, 7  ;;  %s310_s24 = scalar_lea.vmem [#allocation2], %s820_s29 }
  0x29   : > { %s316_s18 = sshll.u32 %s310_s24, 4  ;;  %s1240_s22 = scalar_lea.hbm %s1371_s0, %s821_s19  ;;  %s1242_s18 = int_to_ptr.vmem [resolvable:$true] %s316_s18 }
  0x2a   : > { %s1244_s26 = scalar_lea.sflag [#allocation3], %s306_s27  ;;  %s959_s14 = scalar_lea.hbm %s1240_s22, 256 }
  0x2b   : > { %p960_p4 = scmp.ne.s32.totalorder %s1240_s22, %s959_s14  ;;  %p961_p5 = pneg %p1225_p3 }
  0x2c   : > { %s964_s16 = scalar_lea.hbm %s1371_s0, 512  ;;  %p965_p1 = scmp.lt.s32.totalorder %s1240_s22, %s1371_s0 }
  0x2d   : > { %p962_p11 = pnand %p961_p5, %p960_p4  ;;  %p966_p7 = scmp.lt.s32.totalorder %s964_s16, %s959_s14 }
  0x2f   : > { %p963_p12 = pneg %p962_p11  ;;  %p967_p8 = por %p966_p7, %p965_p1 }
  0x31   : > { %p968_p9 = pnand %p967_p8, %p963_p12 }
  0x33   : > { %971 = shalt.err (!%p968_p9)
}
  0x34   : > { %s972_s27 = scalar_lea.vmem %s1242_s18, 256  ;;  %s1088_s17 = smov [#allocation2]  }
  0x35   : > { %p973_p10 = scmp.ne.s32.totalorder %s1242_s18, %s972_s27  ;;  %s977_s19 = sshll.u32 %s1088_s17, 4  ;;  %s978_s19 = int_to_ptr.vmem [resolvable:$false] %s977_s19 }
  0x36   : > { %s979_s24 = scalar_lea.vmem %s978_s19, 512  ;;  %p980_p4 = scmp.lt.s32.totalorder %s1242_s18, %s978_s19 }
  0x37   : > { %p975_p2 = pnand %p973_p10, %p961_p5  ;;  %p981_p11 = scmp.lt.s32.totalorder %s979_s24, %s972_s27 }
  0x39   : > { %p976_p0 = pneg %p975_p2  ;;  %p982_p6 = por %p981_p11, %p980_p4 }
  0x3b   : > { %p983_p13 = pnand %p982_p6, %p976_p0 }
  0x3d   : > { %986 = shalt.err (!%p983_p13)
}
  0x3e   : > { %s1089_s14 = smov 256   ;;  %s1090_s25 = smov 128  }
  0x3f   : > { %s1091_s29 = smov 8   ;;  %p1402_p5 = scmp.ne.s32.totalorder %s1398_s23, 0 }
  0x40   : > { %879 = dma.hbm_to_vmem [thread:$0]  (!%p1225_p3), %s1240_s22, 256, %s1242_s18, %s1244_s26, %s1089_s14, %s1090_s25, %s1091_s29  }
  0x41   : > { %328 = sbr.rel (%p1402_p5) target bundleno = 679 (0x2a7), region = 44  ;;  %s1268_s16 = sand.u32 (!%p1402_p5), 1, %s1077_s10  }
  0x42   : > { %s823_s11 = sshll.u32 (!%p1402_p5), %s1268_s16, 4  ;;  %s331_s15 = scalar_lea.sflag (!%p1402_p5), [#allocation3], %s1268_s16 }
  0x43   : > { %s334_s27 = scalar_lea.vmem (!%p1402_p5), [#allocation2], %s823_s11  ;;  %p1403_p6 = scmp.ne.s32.totalorder (!%p1402_p5), %s1394_s20, 0 }
  0x46   : > { %1056 = dma.done.wait (%p1403_p6), %s331_s15, 256  }
  0x47   : > { %1058 = vsyncadd (%p1403_p6), %s331_s15, 4294967040  ;;  %p1404_p13 = scmp.eq.s32.totalorder %s1169_s13, 0 }
  0x49   : > { %1060 = dma.done.wait (%p1404_p13), [#allocation6], 64   ;;  %p1405_p3 = pmov %p1404_p13 }
  0x4a   : > { %v1092_v0 = vmov 0.0   ;;  %vm1093_vm0 = vmmov 0   ;;  %v1094_v1 = vmov 0   ;;  %vm524_vm1 = vcmask 64512   ;;  %v829_v2 = vld [vmem:[%s334_s27 + $0x8] sm:$0xff]  ;;  %v395_v3 = vld [vmem:[%s334_s27] sm:$0xff] }
  0x4b   : > { %1062 = vsyncadd (%p1405_p3), [#allocation6], 4294967232  ;;  %857 = vmatprep.subr.mxu1 %v1092_v0  ;;  %859 = vmatprep.mubr.msk.f32.mxu1 %vm1093_vm0, %v1092_v0  ;;  %v831_v4 = vld [vmem:[#allocation5 + $0x1] ss:$0 sm:$0xff]  ;;  %s1095_s18 = smov 1   ;;  %vm425_vm2 = vcmask 195584  }
  0x4c   : > { %932 = vset.pattern.permute.xlu1 %v1094_v1  ;;  %848 = vmatprep.subr.mxu0 %v1092_v0  ;;  %v517_v5 = vld [vmem:[%s1375_s4] sm:$0xff]  ;;  %v411_v8 = vmul.f32 %v831_v4, %v395_v3  ;;  %s825_s14 = sshll.u32 %s1268_s16, 3  ;;  %p386_p12 = scmp.lt.s32.totalorder %s1169_s13, 1 }
  0x4d   : > { %854 = vmatprep.mubr.msk.f32.mxu0 %vm1093_vm0, %v1092_v0  ;;  %931 = vset.pattern.permute.xlu0 %v1094_v1  ;;  %v518_v6 = vld [vmem:[%s1376_s5] sm:$0xff]  ;;  %s1293_s25 = scalar_lea.vmem [#allocation8], %s825_s14  ;;  %s366_s29 = scalar_lea.vmem [#allocation7], %s825_s14 }
  0x4e   : > { %398 = vrot.lane.b32.xlu0 %v829_v2, %s1095_s18  ;;  %858 = vmatpush3.msra.mxu1 %v395_v3  ;;  %v832_v7 = vld [vmem:[#allocation5 + $0x2] ss:$0 sm:$0xff]  ;;  %v830_v11 = vld [vmem:[#allocation5] ss:$0 sm:$0xff]  ;;  %v834_v16 = vld [vmem:[#allocation5 + $0x3] ss:$0 sm:$0xff] }
  0x4f   : > { %860 = vmatmul.mubr.msk.f32.vlgmr.msra.gmra.mxu1 %vm524_vm1, %v517_v5  ;;  %521 = vperm.xlu1 %932, %v518_v6   ;;  %v417_v9 = vmul.f32 %v832_v7, %v829_v2  ;;  %v419_v10 = vld [vmem:[%s1374_s3] sm:$0xff]  ;;  %s1304_s11 = scalar_select %p386_p12, %s1169_s13, 1 }
  0x50   : > { %v418_v14 = vld [vmem:[%s1373_s2] sm:$0xff]  ;;  %s1389_s15 = sshll.u32 %s1169_s13, 7  ;;  %s637_s27 = sshll.u32 %s366_s29, 4  ;;  %s638_s27 = int_to_ptr.vmem [resolvable:$true] %s637_s27 }
  0x51   : > { %849 = vmatpush3.msra.mxu0 %v417_v9  ;;  %s635_s22 = scalar_lea.hbm %s1377_s6, %s1389_s15  ;;  %s611_s23 = scalar_lea.sflag [#allocation4], %s1268_s16 }
  0x52   : > { %850 = vmatprep.subr.mxu0 %v1092_v0  ;;  %422 = vperm.xlu0 %931, %v419_v10   ;;  %s987_s28 = scalar_lea.vmem %s638_s27, 128  ;;  %p1406_p7 = scmp.ne.s32.totalorder %s1395_s21, 0 }
  0x53   : > { %851 = vmatpush3.msra.mxu0 %v411_v8  ;;  %p988_p1 = scmp.ne.s32.totalorder %s638_s27, %s987_s28  ;;  %s1096_s26 = smov [#allocation7]  }
  0x54   : > { %852 = vmatprep.subr.mxu0 %v1092_v0  ;;  %s991_s17 = sshll.u32 %s1096_s26, 4  ;;  %s992_s17 = int_to_ptr.vmem [resolvable:$false] %s991_s17 }
  0x55   : > { %p989_p8 = pnand %p988_p1, %p1406_p7  ;;  %s993_s19 = scalar_lea.vmem %s992_s17, 256 }
  0x56   : > { %p994_p10 = scmp.lt.s32.totalorder %s638_s27, %s992_s17  ;;  %p995_p2 = scmp.lt.s32.totalorder %s993_s19, %s987_s28 }
  0x57   : > { %p990_p9 = pneg %p989_p8 }
  0x58   : > { %p996_p0 = por %p995_p2, %p994_p10 }
  0x5a   : > { %p997_p4 = pnand %p996_p0, %p990_p9 }
  0xc0   : > { %v399_v12 = vpop.permute.xlu0 %398 }
  0xc1   : > { %v405_v13 = vmul.f32 %v830_v11, %v399_v12 }
  0xc3   : > { %853 = vmatpush3.msra.mxu0 %v405_v13 }
  0xc4   : > { %855 = vmatmul.mubr.msk.f32.vlgmr.msra.gmra.mxu0 %vm425_vm2, %v418_v14 }
  0xca   : > { %v522_v15 = vpop.permute.xlu1 %521 }
  0xcd   : > { %v423_v21 = vpop.permute.xlu0 %422 }
 0x10f   : > { %v594_v17 = vpop.f32.mrf.mxu1 }
 0x110   : > { %v595_v18 = vadd.f32 %v594_v17, %v522_v15 }
 0x111   : > { %v861_v19 = vpop.f32.mrf.mxu1 }
 0x112   : > { %v598_v20 = vmul.f32 %v834_v16, %v595_v18 }
 0x114   : > { %600 = vadd.xlane.f32.xlu0 %v598_v20  ;;  %599 = vst [vmem:[%s1293_s25] sm:$0xff] %v598_v20 }
 0x184   : > { %v495_v22 = vpop.f32.mrf.mxu0 }
 0x185   : > { %v496_v23 = vadd.f32 %v495_v22, %v423_v21 }
 0x186   : > { %v856_v24 = vpop.f32.mrf.mxu0 }
 0x187   : > { %v503_v25 = vmul.f32 %v834_v16, %v496_v23 }
 0x189   : > { %505 = vadd.xlane.f32.xlu1 %v503_v25  ;;  %504 = vst [vmem:[%s366_s29] sm:$0xff] %v503_v25 }
 0x19d   : > { %v1296_v26 = vpop.xlane.xlu0 %600 }
 0x19e   : > { %v602_v27 = vmul.f32 0.125, %v1296_v26 }
 0x1a0   : > { %v603_v28 = vsub.f32 %v598_v20, %v602_v27 }
 0x1a2   : > { %v604_v29 = vmul.f32 %v834_v16, %v603_v28 }
 0x1a4   : > { %v605_v30 = vmul.f32 %v604_v29, %v604_v29 }
 0x1a6   : > { %606 = vadd.xlane.f32.xlu0 %v605_v30 }
 0x212   : > { %v1299_v31 = vpop.xlane.xlu1 %505 }
 0x213   : > { %v507_v32 = vmul.f32 0.125, %v1299_v31 }
 0x215   : > { %v508_v33 = vsub.f32 %v503_v25, %v507_v32 }
 0x217   : > { %v509_v34 = vmul.f32 %v834_v16, %v508_v33 }
 0x219   : > { %v510_v35 = vmul.f32 %v509_v34, %v509_v34 }
 0x21b   : > { %511 = vadd.xlane.f32.xlu1 %v510_v35 }
 0x21c   : > { %1000 = shalt.err (!%p997_p4)
}
 0x21d   : > { %s1001_s24 = scalar_lea.hbm %s635_s22, 128  ;;  %s1005_s18 = scalar_lea.hbm %s1377_s6, 256 }
 0x21e   : > { %p1002_p11 = scmp.ne.s32.totalorder %s635_s22, %s1001_s24  ;;  %p1006_p13 = scmp.lt.s32.totalorder %s635_s22, %s1377_s6 }
 0x21f   : > { %p1007_p3 = scmp.lt.s32.totalorder %s1005_s18, %s1001_s24 }
 0x220   : > { %p1003_p5 = pnand %p1002_p11, %p1406_p7 }
 0x221   : > { %p1008_p12 = por %p1007_p3, %p1006_p13 }
 0x222   : > { %p1004_p6 = pneg %p1003_p5 }
 0x224   : > { %p1009_p1 = pnand %p1008_p12, %p1004_p6 }
 0x226   : > { %1012 = shalt.err (!%p1009_p1)
}
 0x227   : > { %868 = dma.vmem_to_hbm [thread:$0]  (%p1406_p7), %s638_s27, 128, %s635_s22, %s611_s23  }
 0x228   : > { %s1407_s28 = sshll.u32 %s1169_s13, 7  ;;  %s653_s14 = sshll.u32 %s1293_s25, 4  ;;  %s654_s14 = int_to_ptr.vmem [resolvable:$true] %s653_s14 }
 0x229   : > { %s651_s19 = scalar_lea.hbm %s1379_s8, %s1407_s28  ;;  %s620_s15 = scalar_lea.sflag [#allocation9], %s1268_s16 }
 0x22a   : > { %s1013_s29 = scalar_lea.vmem %s654_s14, 128  ;;  %s1097_s24 = smov [#allocation8]  }
 0x22b   : > { %p1014_p8 = scmp.ne.s32.totalorder %s654_s14, %s1013_s29  ;;  %s1017_s18 = sshll.u32 %s1097_s24, 4  ;;  %s1018_s18 = int_to_ptr.vmem [resolvable:$false] %s1017_s18 }
 0x22c   : > { %s1019_s20 = scalar_lea.vmem %s1018_s18, 256  ;;  %p1020_p2 = scmp.lt.s32.totalorder %s654_s14, %s1018_s18 }
 0x22d   : > { %p1015_p9 = pnand %p1014_p8, %p1406_p7  ;;  %p1021_p0 = scmp.lt.s32.totalorder %s1019_s20, %s1013_s29 }
 0x22f   : > { %p1016_p10 = pneg %p1015_p9  ;;  %p1022_p4 = por %p1021_p0, %p1020_p2 }
 0x231   : > { %p1023_p11 = pnand %p1022_p4, %p1016_p10 }
 0x233   : > { %1026 = shalt.err (!%p1023_p11)
}
 0x234   : > { %s1027_s13 = scalar_lea.hbm %s651_s19, 128  ;;  %s1031_s27 = scalar_lea.hbm %s1379_s8, 256 }
 0x235   : > { %p1028_p5 = scmp.ne.s32.totalorder %s651_s19, %s1027_s13  ;;  %p1032_p3 = scmp.lt.s32.totalorder %s651_s19, %s1379_s8 }
 0x236   : > { %p1033_p12 = scmp.lt.s32.totalorder %s1031_s27, %s1027_s13 }
 0x237   : > { %p1029_p6 = pnand %p1028_p5, %p1406_p7 }
 0x238   : > { %p1034_p1 = por %p1033_p12, %p1032_p3 }
 0x239   : > { %p1030_p13 = pneg %p1029_p6 }
 0x23b   : > { %p1035_p8 = pnand %p1034_p1, %p1030_p13 }
 0x23d   : > { %1038 = shalt.err (!%p1035_p8)
}
 0x23e   : > { %869 = dma.vmem_to_hbm [thread:$0]  (%p1406_p7), %s654_s14, 128, %s651_s19, %s620_s15   ;;  %vm513_vm3 = vcmask 7168   ;;  %vm515_vm4 = vcmask 15360   ;;  %v607_v36 = vpop.xlane.xlu0 %606 }
 0x23f   : > { %s827_s28 = sshll.u32 %s1304_s11, 3  ;;  %v608_v37 = vsel %vm513_vm3, %v1296_v26, %v607_v36 }
 0x240   : > { %s393_s29 = scalar_lea.vmem %s1380_s9, %s827_s28  ;;  %s389_s20 = scalar_lea.vmem %s1378_s7, %s827_s28 }
 0x241   : > { %609 = vst.msk [vmem:[%s393_s29] sm:$0xff] %vm515_vm4, %v608_v37 }
 0x2a4   : > { %v512_v38 = vpop.xlane.xlu1 %511 }
 0x2a5   : > { %v514_v39 = vsel %vm513_vm3, %v1299_v31, %v512_v38 }
 0x2a6   : > { %516 = vst.msk [vmem:[%s389_s20] sm:$0xff] %vm515_vm4, %v514_v39 }
 0x2a7 PF: > { %s1408_s21 = sld [smem:[#allocation17_spill]]  ;;  %s668_s11 = sand.u32 1, %s1073_s30  }
 0x2a8   : > { %p1410_p9 = scmp.ge.s32.totalorder %s1085_s12, 2  ;;  %s669_s19 = scalar_lea.sflag [#allocation4], %s668_s11 }
 0x2ad   : > { %p1409_p7 = scmp.ne.s32.totalorder %s1408_s21, 0 }
 0x2af   : > { %p881_p10 = pnand %p1410_p9, %p1409_p7 }
 0x2b1   : > { %p882_p2 = pneg %p881_p10 }
 0x2b3   : > { %1064 = dma.done.wait (%p882_p2), %s669_s19, 128  }
 0x2b4   : > { %1066 = vsyncadd (%p882_p2), %s669_s19, 4294967168  ;;  %s685_s14 = scalar_lea.sflag [#allocation9], %s668_s11 }
 0x2b5   : > { %1068 = dma.done.wait (%p882_p2), %s685_s14, 128  }
 0x2b6   : > { %1070 = vsyncadd (%p882_p2), %s685_s14, 4294967168  ;;  %s1411_s12 = sld [smem:[#allocation15_spill]]  ;;  %s1414_s30 = smov %s1077_s10 }
 0x2b7   : > { %s1412_s15 = sld [smem:[#allocation14_spill]] }
 0x2b8   : > { %s1413_s11 = sld [smem:[#allocation16_spill]] }
 0x2bc   : > { %p27_p0 = scmp.ge.s32.totalorder %s1411_s12, 4  }
 0x2bd   : > { %s1415_s10 = smov %s1412_s15 }
 0x2be   :  { %29 = sbr.rel (!%p27_p0) target bundleno = 8 (0x8), region = 135 }
 0x2c3   :  { %697 = vsyncpa [#allocation3], 1 }
 0x2c4   :  { %699 = vsyncpa [#allocation3 + $0x1], 1 }
 0x2c5   :  { %700 = vsyncpa [#allocation6], 1 }
 0x2c6   :  { %701 = vsyncpa [#allocation4], 1 }
 0x2c7   :  { %703 = vsyncpa [#allocation4 + $0x1], 1 }
 0x2c8   :  { %704 = vsyncpa [#allocation9], 1 }
 0x2c9   :  { %706 = vsyncpa [#allocation9 + $0x1], 1 }

</bundles_post_ra>
